<compile_context>
chip_gen: v7x
topology: tpu7x:2x2x1
jax: 0.10.0
libtpu: 0.0.40
codegen_flags: <defaults>
</compile_context>

<pallas_src>
import functools

import jax
import jax.numpy as jnp
from jax.experimental import pallas as pl
from jax.experimental.pallas import tpu as pltpu


# ----------------------------------------------------------------------------
# Generation-aware VMEM budget / tile selection
# ----------------------------------------------------------------------------
def _vmem_limit_bytes():
    """Scoped-VMEM budget from the actual generation (64 MiB v7x, 128 MiB
    v5e/v6e); leaves headroom for Mosaic-internal scratch."""
    cap = 64 * 1024 * 1024  # conservative default (v7x)
    try:
        info = pltpu.get_tpu_info()
        cap_attr = getattr(info, "vmem_capacity_bytes", None)
        if cap_attr:
            cap = int(cap_attr)
    except Exception:
        pass
    return max(32 * 1024 * 1024, min(cap * 3 // 4, cap - 8 * 1024 * 1024))


def _linear_row_tile(n, e_in, e_out, budget):
    """Largest HBM/MXU-friendly row tile whose working set fits the budget."""
    if n <= 256:
        return n  # single full block (always a legal block shape)
    fixed = 2 * e_in * e_out * 2 + 2 * e_out * 4          # resident bf16 W (dbl-buf) + bias

    def fits(t):
        per_step = 2 * t * e_in * 4 + 2 * t * e_out * 4 + 2 * t * e_out * 4
        return fixed + per_step <= budget

    for t in (2048, 1024, 512, 256):
        if t <= n and n % t == 0 and fits(t):
            return t
    for t in (2048, 1024, 512, 256):
        if t <= n and fits(t):
            return t
    return 256


def _attn_q_tile(s, b, d, budget):
    """Query tile for attention: K/V (B, S, D) stay resident; budget the rest."""
    if s <= 128:
        return s
    fixed = 4 * b * s * d * 4                               # K + V, double-buffered, f32

    def fits(t):
        per_step = (4 * b * t * d * 4        # q block, double-buffered, f32
                    + 2 * b * t * d * 2      # PV output block, double-buffered, bf16
                    + 6 * t * s * 4)         # attn-mean block + softmax temporaries
        return fixed + per_step <= budget

    for t in (1024, 512, 256, 128):
        if t <= s and s % t == 0 and fits(t):
            return t
    for t in (1024, 512, 256, 128):
        if t <= s and fits(t):
            return t
    return 128


# ----------------------------------------------------------------------------
# Kernel 1: UHGLinear   y = x @ W + b ;  y / (||y||_2 + 1e-8)
# ----------------------------------------------------------------------------
def _uhg_linear_kernel(x_ref, w_ref, b_ref, o_ref):
    # bf16 MXU operands, f32 accumulation; bias add and normalization in f32.
    x = x_ref[...].astype(jnp.bfloat16)                    # (tn, E_in)
    w = w_ref[...]                                         # (E_in, E_out) bf16, resident
    y = jnp.dot(x, w, preferred_element_type=jnp.float32) + b_ref[...]
    norm = jnp.sqrt(jnp.sum(y * y, axis=-1, keepdims=True))
    # Per-row reciprocal on the EUP + VPU multiply; eps placement matches the
    # torch reference: y / (||y|| + 1e-8).
    o_ref[...] = (y * pl.reciprocal(norm + 1e-8, approx=False)).astype(o_ref.dtype)


def uhg_linear(x, w, b, *, vmem_limit, out_dtype=jnp.float32):
    """x: (N, E_in), w: (E_in, E_out) (= torch weight.T), b: (E_out,)."""
    n, e_in = x.shape
    e_out = w.shape[1]
    tn = _linear_row_tile(n, e_in, e_out, vmem_limit)
    return pl.pallas_call(
        _uhg_linear_kernel,
        out_shape=jax.ShapeDtypeStruct((n, e_out), out_dtype),
        grid=(pl.cdiv(n, tn),),
        in_specs=[
            pl.BlockSpec((tn, e_in), lambda i: (i, 0)),
            pl.BlockSpec((e_in, e_out), lambda i: (0, 0)),   # resident across rows
            pl.BlockSpec((1, e_out), lambda i: (0, 0)),
        ],
        out_specs=pl.BlockSpec((tn, e_out), lambda i: (i, 0)),
        compiler_params=pltpu.CompilerParams(
            dimension_semantics=("parallel",),
            vmem_limit_bytes=vmem_limit),
    )(x, w.astype(jnp.bfloat16), jnp.asarray(b, jnp.float32).reshape(1, e_out))


# ----------------------------------------------------------------------------
# Kernel 2: UHG attention per (head, query-tile); batch folded into the kernel.
#   scores[i, j] = -||q_i - k_j||_2 ; softmax over j ; out = attn @ v
#   The batch-mean of attn is accumulated locally and written once per block.
# ----------------------------------------------------------------------------
def _uhg_attn_kernel(q_ref, k_ref, v_ref, o_ref, attn_ref):
    bsz = q_ref.shape[1]                                   # static block shape

    def one_batch(b):
        q = q_ref[0, b]                                    # (tq, D) f32
        k = k_ref[0, b]                                    # (S, D)  f32
        # Squared Euclidean distance via ||q||^2 + ||k||^2 - 2 q.k (MXU
        # contraction, no transposed copy of k).  q.k stays in f32: bf16 here
        # would blow up the near-pair distances through the sqrt.
        qq = jnp.sum(q * q, axis=-1, keepdims=True)        # (tq, 1)
        kk = jnp.sum(k * k, axis=-1, keepdims=True)        # (S, 1)
        qk = jax.lax.dot_general(
            q, k, dimension_numbers=(((1,), (1,)), ((), ())),
            preferred_element_type=jnp.float32)            # (tq, S)
        d2 = jnp.maximum(qq + kk.T - 2.0 * qk, 0.0)
        scores = -jnp.sqrt(d2)                             # in [-2, 0] (unit-norm UHG
        # points => head-slice norms <= 1), so no max-subtract is needed for a
        # stable softmax.  Per-row reciprocal on the EUP.
        e = jnp.exp(scores)
        inv_l = pl.reciprocal(jnp.sum(e, axis=-1, keepdims=True), approx=True)
        attn = e * inv_l                                   # (tq, S) f32

        pv = jnp.dot(attn.astype(jnp.bfloat16),
                     v_ref[0, b].astype(jnp.bfloat16),
                     preferred_element_type=jnp.float32)
        o_ref[0, b] = pv.astype(o_ref.dtype)
        return attn

    # Batch-mean of the attention weights, accumulated in VMEM inside this grid
    # step and written once — only (H, S, S) ever reaches HBM.
    attn_ref[0] = one_batch(0)
    if bsz > 1:
        @pl.loop(1, bsz)
        def _(b):
            attn_ref[0] += one_batch(b)
        attn_ref[0] = attn_ref[0] * (1.0 / bsz)


def uhg_attention(qh, kh, vh, *, vmem_limit):
    """qh/kh/vh: (H, B, S, D) f32 -> (out (H, B, S, D) bf16, attn_mean (H, S, S) f32)."""
    h, bsz, s, d = qh.shape
    tq = _attn_q_tile(s, bsz, d, vmem_limit)
    return pl.pallas_call(
        _uhg_attn_kernel,
        out_shape=(
            jax.ShapeDtypeStruct((h, bsz, s, d), jnp.bfloat16),
            jax.ShapeDtypeStruct((h, s, s), jnp.float32),
        ),
        grid=(h, pl.cdiv(s, tq)),
        in_specs=[
            pl.BlockSpec((1, bsz, tq, d), lambda hi, qi: (hi, 0, qi, 0)),
            pl.BlockSpec((1, bsz, s, d), lambda hi, qi: (hi, 0, 0, 0)),   # resident per head
            pl.BlockSpec((1, bsz, s, d), lambda hi, qi: (hi, 0, 0, 0)),   # resident per head
        ],
        out_specs=(
            pl.BlockSpec((1, bsz, tq, d), lambda hi, qi: (hi, 0, qi, 0)),
            pl.BlockSpec((1, tq, s), lambda hi, qi: (hi, qi, 0)),
        ),
        compiler_params=pltpu.CompilerParams(
            dimension_semantics=("parallel", "parallel"),
            vmem_limit_bytes=vmem_limit),
    )(qh, kh, vh)


# ----------------------------------------------------------------------------
# Full module forward (glue in plain JAX)
# ----------------------------------------------------------------------------
@functools.partial(jax.jit, static_argnames=("num_heads",))
def uhg_multihead_attention(query, key, value, params, *, num_heads):
    """query/key/value: (S, B, E) float32.

    Returns:
      output:    (S, B, E)   -- matches the torch module (dropout=0, no masks)
      attn_mean: (S, H, S)   -- attn_weights.mean(dim=2); the module's
                 (S, H, S, S) return is a pure replication of this along a new
                 axis (see expand_attn_weights) and is NOT materialized here.
    """
    S, B, E = query.shape
    H = num_heads
    D = E // H
    assert D * H == E, "embed_dim must be divisible by num_heads"
    N = S * B
    vmem_limit = _vmem_limit_bytes()

    # ---- q/k/v UHG projections (independent row-tiled pallas_calls) --------
    q = uhg_linear(query.reshape(N, E), params["q_w"], params["q_b"], vmem_limit=vmem_limit)
    k = uhg_linear(key.reshape(N, E), params["k_w"], params["k_b"], vmem_limit=vmem_limit)
    v = uhg_linear(value.reshape(N, E), params["v_w"], params["v_b"], vmem_limit=vmem_limit)

    def heads(x):                                   # (N, E) -> (H, B, S, D)
        return x.reshape(S, B, H, D).transpose(2, 1, 0, 3)

    qh, kh, vh = heads(q), heads(k), heads(v)

    outh, attn_mean_h = uhg_attention(qh, kh, vh, vmem_limit=vmem_limit)

    # (H, B, S, D) bf16 -> (S, B, H, D) -> (N, E), then output projection.
    out = outh.transpose(2, 1, 0, 3).reshape(N, E)
    out = uhg_linear(out, params["o_w"], params["o_b"], vmem_limit=vmem_limit).reshape(S, B, E)

    # torch attn_weights is [i, h, b, j]; kernel mean is [h, i, j] -> (S, H, S)
    attn_mean = attn_mean_h.transpose(1, 0, 2)
    return out, attn_mean


def expand_attn_weights(attn_mean):
    """Replicate the batch-mean weights to the torch module's (S, H, S, S)
    shape (torch does this with a zero-copy .expand)."""
    s, h, _ = attn_mean.shape
    return jnp.broadcast_to(attn_mean[:, :, None, :], (s, h, s, s))


# ----------------------------------------------------------------------------
# Deterministic parameter init (kaiming-uniform-style bounds, synthetic)
# ----------------------------------------------------------------------------
def init_params(rng, embed_dim):
    bound = 1.0 / jnp.sqrt(embed_dim)
    params = {}
    for name in ("q", "k", "v", "o"):
        rng, kw, kb = jax.random.split(rng, 3)
        # weight stored transposed: (E_in, E_out)
        params[name + "_w"] = jax.random.uniform(
            kw, (embed_dim, embed_dim), jnp.float32, -bound, bound)
        params[name + "_b"] = jax.random.uniform(
            kb, (embed_dim,), jnp.float32, -bound, bound)
    return params


# ----------------------------------------------------------------------------
# Pure-jnp reference (mirrors the PyTorch module: dropout=0, no masks)
# ----------------------------------------------------------------------------
def _reference_forward(query, key, value, params, num_heads):
    hp = jax.lax.Precision.HIGHEST
    S, B, E = query.shape
    H = num_heads
    D = E // H

    def lin(x, w, b):
        y = jnp.einsum("ne,eo->no", x.reshape(-1, E), w, precision=hp) + b
        nrm = jnp.sqrt(jnp.sum(y * y, axis=-1, keepdims=True))
        return (y / (nrm + 1e-8)).reshape(x.shape)

    q = lin(query, params["q_w"], params["q_b"])
    k = lin(key, params["k_w"], params["k_b"])
    v = lin(value, params["v_w"], params["v_b"])

    def heads(x):                                   # (S,B,E) -> (H,B,S,D)
        return x.reshape(S, B, H, D).transpose(2, 1, 0, 3)

    qh, kh, vh = heads(q), heads(k), heads(v)
    diff = qh[:, :, :, None, :] - kh[:, :, None, :, :]          # (H,B,Sq,Sk,D)
    scores = -jnp.sqrt(jnp.sum(diff * diff, axis=-1))
    attn = jax.nn.softmax(scores, axis=-1)                      # (H,B,Sq,Sk)
    outh = jnp.einsum("hbij,hbjd->hbid", attn, vh, precision=hp)
    out = lin(outh.transpose(2, 1, 0, 3).reshape(S, B, E),
              params["o_w"], params["o_b"])
    attn_mean = attn.mean(axis=1).transpose(1, 0, 2)            # (S, H, S)
    return out, attn_mean


if __name__ == "__main__":
    S, B, E, H = 8, 2, 32, 4
    root = jax.random.PRNGKey(0)
    k_q, k_k, k_v, k_p = jax.random.split(root, 4)

    query = jax.random.normal(k_q, (S, B, E), jnp.float32)
    key = jax.random.normal(k_k, (S, B, E), jnp.float32)
    value = jax.random.normal(k_v, (S, B, E), jnp.float32)
    params = init_params(k_p, E)

    out, attn_mean = uhg_multihead_attention(query, key, value, params, num_heads=H)
    jax.block_until_ready((out, attn_mean))

    assert out.shape == (S, B, E)
    assert attn_mean.shape == (S, H, S)
    attn_full = expand_attn_weights(attn_mean)     # torch-shaped (S, H, S, S)
    assert attn_full.shape == (S, H, S, S)
    assert bool(jnp.all(jnp.isfinite(out)))

    # bf16 MXU operands (f32 accumulation) => bf16-appropriate tolerance.
    out_ref, attn_ref = _reference_forward(query, key, value, params, H)
    assert bool(jnp.allclose(out, out_ref, rtol=2e-2, atol=2e-2)), "output mismatch"
    assert bool(jnp.allclose(attn_mean, attn_ref, rtol=2e-2, atol=2e-2)), "attn mismatch"

    print("KERNEL_OK")
</pallas_src>

<mosaic_0001>
module attributes {stable_mosaic.version = 11 : i64} {
  func.func @_uhg_linear_kernel(%arg0: i32, %arg1: memref<16x32xf32, #tpu.memory_space<vmem>>, %arg2: memref<32x32xbf16, #tpu.memory_space<vmem>>, %arg3: memref<1x32xf32, #tpu.memory_space<vmem>>, %arg4: memref<16x32xf32, #tpu.memory_space<vmem>>) attributes {dimension_semantics = [#tpu.dimension_semantics<parallel>], iteration_bounds = array<i64: 1>, scalar_prefetch = 0 : i64, scratch_operands = 0 : i64, tpu.core_type = #tpu.core_type<tc>, window_params = [{transform_indices = @transform_0, window_bounds = array<i64: 16, 32>}, {pipeline_mode = #tpu.pipeline_mode<synchronous>, transform_indices = @transform_1, window_bounds = array<i64: 32, 32>}, {pipeline_mode = #tpu.pipeline_mode<synchronous>, transform_indices = @transform_2, window_bounds = array<i64: 1, 32>}, {transform_indices = @transform_3, window_bounds = array<i64: 16, 32>}]} {
    %c0 = arith.constant 0 : index
    %c0_0 = arith.constant 0 : index
    %0 = vector.load %arg1[%c0, %c0_0] : memref<16x32xf32, #tpu.memory_space<vmem>>, vector<16x32xf32>
    %1 = arith.truncf %0 : vector<16x32xf32> to vector<16x32xbf16>
    %c0_1 = arith.constant 0 : index
    %c0_2 = arith.constant 0 : index
    %2 = vector.load %arg2[%c0_1, %c0_2] : memref<32x32xbf16, #tpu.memory_space<vmem>>, vector<32x32xbf16>
    %cst = arith.constant dense<0.000000e+00> : vector<16x32xf32>
    %3 = tpu.matmul %1, %2, %cst {dimension_numbers = #tpu.dot_dimension_numbers<[1], [0], [0], [1], [0, 0, 1, 1], [], []>} : vector<16x32xbf16>, vector<32x32xbf16>, vector<16x32xf32> -> vector<16x32xf32>
    %c0_3 = arith.constant 0 : index
    %c0_4 = arith.constant 0 : index
    %4 = vector.load %arg3[%c0_3, %c0_4] : memref<1x32xf32, #tpu.memory_space<vmem>>, vector<1x32xf32>
    %5 = vector.broadcast %4 : vector<1x32xf32> to vector<16x32xf32>
    %6 = arith.addf %3, %5 : vector<16x32xf32>
    %7 = arith.mulf %6, %6 : vector<16x32xf32>
    %cst_5 = arith.constant dense<0.000000e+00> : vector<16xf32>
    %8 = vector.multi_reduction <add>, %7, %cst_5 [1] : vector<16x32xf32> to vector<16xf32>
    %9 = vector.shape_cast %8 : vector<16xf32> to vector<16x1xf32>
    %10 = math.sqrt %9 : vector<16x1xf32>
    %cst_6 = arith.constant 9.99999993E-9 : f32
    %11 = vector.broadcast %cst_6 : f32 to vector<16x1xf32>
    %12 = arith.addf %10, %11 : vector<16x1xf32>
    %13 = tpu.reciprocal %12 : vector<16x1xf32> -> vector<16x1xf32>
    %14 = vector.broadcast %13 : vector<16x1xf32> to vector<16x32xf32>
    %15 = arith.mulf %6, %14 : vector<16x32xf32>
    %c0_7 = arith.constant 0 : index
    %c0_8 = arith.constant 0 : index
    %16 = vector.load %arg4[%c0_7, %c0_8] : memref<16x32xf32, #tpu.memory_space<vmem>>, vector<16x32xf32>
    tpu.vector_store %arg4[%c0_7, %c0_8], %15 {strides = array<i32>} : memref<16x32xf32, #tpu.memory_space<vmem>>, vector<16x32xf32>,
    return
  }
  func.func @transform_0(%arg0: i32) -> (i32, i32) {
    %c0_i32 = arith.constant 0 : i32
    %c0_i32_0 = arith.constant 0 : i32
    return %arg0, %c0_i32 : i32, i32
  }
  func.func @transform_1(%arg0: i32) -> (i32, i32) {
    %c0_i32 = arith.constant 0 : i32
    %c0_i32_0 = arith.constant 0 : i32
    %c0_i32_1 = arith.constant 0 : i32
    return %c0_i32, %c0_i32_0 : i32, i32
  }
  func.func @transform_2(%arg0: i32) -> (i32, i32) {
    %c0_i32 = arith.constant 0 : i32
    %c0_i32_0 = arith.constant 0 : i32
    %c0_i32_1 = arith.constant 0 : i32
    return %c0_i32, %c0_i32_0 : i32, i32
  }
  func.func @transform_3(%arg0: i32) -> (i32, i32) {
    %c0_i32 = arith.constant 0 : i32
    %c0_i32_0 = arith.constant 0 : i32
    return %arg0, %c0_i32 : i32, i32
  }
}

module attributes {stable_mosaic.version = 11 : i64} {
  func.func @_uhg_attn_kernel(%arg0: i32, %arg1: i32, %arg2: memref<1x2x8x8xf32, #tpu.memory_space<vmem>>, %arg3: memref<1x2x8x8xf32, #tpu.memory_space<vmem>>, %arg4: memref<1x2x8x8xf32, #tpu.memory_space<vmem>>, %arg5: memref<1x2x8x8xbf16, #tpu.memory_space<vmem>>, %arg6: memref<1x8x8xf32, #tpu.memory_space<vmem>>) attributes {dimension_semantics = [#tpu.dimension_semantics<parallel>, #tpu.dimension_semantics<parallel>], iteration_bounds = array<i64: 4, 1>, scalar_prefetch = 0 : i64, scratch_operands = 0 : i64, tpu.core_type = #tpu.core_type<tc>, window_params = [{transform_indices = @transform_0, window_bounds = array<i64: 1, 2, 8, 8>}, {transform_indices = @transform_1, window_bounds = array<i64: 1, 2, 8, 8>}, {transform_indices = @transform_2, window_bounds = array<i64: 1, 2, 8, 8>}, {transform_indices = @transform_3, window_bounds = array<i64: 1, 2, 8, 8>}, {transform_indices = @transform_4, window_bounds = array<i64: 1, 8, 8>}]} {
    %c0 = arith.constant 0 : index
    %c0_0 = arith.constant 0 : index
    %c0_1 = arith.constant 0 : index
    %c0_2 = arith.constant 0 : index
    %0 = vector.load %arg2[%c0, %c0_0, %c0_1, %c0_2] : memref<1x2x8x8xf32, #tpu.memory_space<vmem>>, vector<1x1x8x8xf32>
    %1 = vector.shape_cast %0 : vector<1x1x8x8xf32> to vector<8x8xf32>
    %c0_3 = arith.constant 0 : index
    %c0_4 = arith.constant 0 : index
    %c0_5 = arith.constant 0 : index
    %c0_6 = arith.constant 0 : index
    %2 = vector.load %arg3[%c0_3, %c0_4, %c0_5, %c0_6] : memref<1x2x8x8xf32, #tpu.memory_space<vmem>>, vector<1x1x8x8xf32>
    %3 = vector.shape_cast %2 : vector<1x1x8x8xf32> to vector<8x8xf32>
    %4 = arith.mulf %1, %1 : vector<8x8xf32>
    %cst = arith.constant dense<0.000000e+00> : vector<8xf32>
    %5 = vector.multi_reduction <add>, %4, %cst [1] : vector<8x8xf32> to vector<8xf32>
    %6 = vector.shape_cast %5 : vector<8xf32> to vector<8x1xf32>
    %7 = arith.mulf %3, %3 : vector<8x8xf32>
    %cst_7 = arith.constant dense<0.000000e+00> : vector<8xf32>
    %8 = vector.multi_reduction <add>, %7, %cst_7 [1] : vector<8x8xf32> to vector<8xf32>
    %9 = vector.shape_cast %8 : vector<8xf32> to vector<8x1xf32>
    %cst_8 = arith.constant dense<0.000000e+00> : vector<8x8xf32>
    %10 = tpu.matmul %1, %3, %cst_8 {dimension_numbers = #tpu.dot_dimension_numbers<[1], [1], [0], [0], [0, 0, 1, 0], [], []>} : vector<8x8xf32>, vector<8x8xf32>, vector<8x8xf32> -> vector<8x8xf32>
    %11 = tpu.transpose %9, [1, 0] : vector<8x1xf32> -> vector<1x8xf32>
    %12 = vector.broadcast %6 : vector<8x1xf32> to vector<8x8xf32>
    %13 = vector.broadcast %11 : vector<1x8xf32> to vector<8x8xf32>
    %14 = arith.addf %12, %13 : vector<8x8xf32>
    %cst_9 = arith.constant 2.000000e+00 : f32
    %15 = vector.broadcast %cst_9 : f32 to vector<8x8xf32>
    %16 = arith.mulf %15, %10 : vector<8x8xf32>
    %17 = arith.subf %14, %16 : vector<8x8xf32>
    %cst_10 = arith.constant 0.000000e+00 : f32
    %18 = vector.broadcast %cst_10 : f32 to vector<8x8xf32>
    %19 = arith.maximumf %17, %18 : vector<8x8xf32>
    %20 = math.sqrt %19 : vector<8x8xf32>
    %cst_11 = arith.constant 0.000000e+00 : f32
    %21 = vector.broadcast %cst_11 : f32 to vector<8x8xf32>
    %22 = arith.subf %21, %20 : vector<8x8xf32>
    %23 = math.exp %22 : vector<8x8xf32>
    %cst_12 = arith.constant dense<0.000000e+00> : vector<8xf32>
    %24 = vector.multi_reduction <add>, %23, %cst_12 [1] : vector<8x8xf32> to vector<8xf32>
    %25 = vector.shape_cast %24 : vector<8xf32> to vector<8x1xf32>
    %26 = tpu.reciprocal %25 {approx = true} : vector<8x1xf32> -> vector<8x1xf32>
    %27 = vector.broadcast %26 : vector<8x1xf32> to vector<8x8xf32>
    %28 = arith.mulf %23, %27 : vector<8x8xf32>
    %29 = arith.truncf %28 : vector<8x8xf32> to vector<8x8xbf16>
    %c0_13 = arith.constant 0 : index
    %c0_14 = arith.constant 0 : index
    %c0_15 = arith.constant 0 : index
    %c0_16 = arith.constant 0 : index
    %30 = vector.load %arg4[%c0_13, %c0_14, %c0_15, %c0_16] : memref<1x2x8x8xf32, #tpu.memory_space<vmem>>, vector<1x1x8x8xf32>
    %31 = vector.shape_cast %30 : vector<1x1x8x8xf32> to vector<8x8xf32>
    %32 = arith.truncf %31 : vector<8x8xf32> to vector<8x8xbf16>
    %cst_17 = arith.constant dense<0.000000e+00> : vector<8x8xf32>
    %33 = tpu.matmul %29, %32, %cst_17 {dimension_numbers = #tpu.dot_dimension_numbers<[1], [0], [0], [1], [0, 0, 1, 1], [], []>} : vector<8x8xbf16>, vector<8x8xbf16>, vector<8x8xf32> -> vector<8x8xf32>
    %34 = arith.truncf %33 : vector<8x8xf32> to vector<8x8xbf16>
    %c0_18 = arith.constant 0 : index
    %c0_19 = arith.constant 0 : index
    %c0_20 = arith.constant 0 : index
    %c0_21 = arith.constant 0 : index
    %35 = vector.load %arg5[%c0_18, %c0_19, %c0_20, %c0_21] : memref<1x2x8x8xbf16, #tpu.memory_space<vmem>>, vector<1x1x8x8xbf16>
    %36 = vector.shape_cast %35 : vector<1x1x8x8xbf16> to vector<8x8xbf16>
    %37 = vector.shape_cast %34 : vector<8x8xbf16> to vector<1x1x8x8xbf16>
    tpu.vector_store %arg5[%c0_18, %c0_19, %c0_20, %c0_21], %37 {strides = array<i32>} : memref<1x2x8x8xbf16, #tpu.memory_space<vmem>>, vector<1x1x8x8xbf16>,
    %c0_22 = arith.constant 0 : index
    %c0_23 = arith.constant 0 : index
    %c0_24 = arith.constant 0 : index
    %38 = vector.load %arg6[%c0_22, %c0_23, %c0_24] : memref<1x8x8xf32, #tpu.memory_space<vmem>>, vector<1x8x8xf32>
    %39 = vector.shape_cast %38 : vector<1x8x8xf32> to vector<8x8xf32>
    %40 = vector.shape_cast %28 : vector<8x8xf32> to vector<1x8x8xf32>
    tpu.vector_store %arg6[%c0_22, %c0_23, %c0_24], %40 {strides = array<i32>} : memref<1x8x8xf32, #tpu.memory_space<vmem>>, vector<1x8x8xf32>,
    %c0_i32 = arith.constant 0 : i32
    %c1_i32 = arith.constant 1 : i32
    %41 = arith.muli %c0_i32, %c1_i32 : i32
    %c1_i32_25 = arith.constant 1 : i32
    %42 = arith.addi %c1_i32_25, %41 : i32
    %c0_26 = arith.constant 0 : index
    %c0_27 = arith.constant 0 : index
    %c0_28 = arith.constant 0 : index
    %43 = vector.load %arg6[%c0_26, %c0_27, %c0_28] : memref<1x8x8xf32, #tpu.memory_space<vmem>>, vector<1x8x8xf32>
    %44 = vector.shape_cast %43 : vector<1x8x8xf32> to vector<8x8xf32>
    %c0_29 = arith.constant 0 : index
    %45 = arith.index_cast %42 : i32 to index
    %c0_30 = arith.constant 0 : index
    %c0_31 = arith.constant 0 : index
    %46 = vector.load %arg2[%c0_29, %45, %c0_30, %c0_31] : memref<1x2x8x8xf32, #tpu.memory_space<vmem>>, vector<1x1x8x8xf32>
    %47 = vector.shape_cast %46 : vector<1x1x8x8xf32> to vector<8x8xf32>
    %c0_32 = arith.constant 0 : index
    %48 = arith.index_cast %42 : i32 to index
    %c0_33 = arith.constant 0 : index
    %c0_34 = arith.constant 0 : index
    %49 = vector.load %arg3[%c0_32, %48, %c0_33, %c0_34] : memref<1x2x8x8xf32, #tpu.memory_space<vmem>>, vector<1x1x8x8xf32>
    %50 = vector.shape_cast %49 : vector<1x1x8x8xf32> to vector<8x8xf32>
    %51 = arith.mulf %47, %47 : vector<8x8xf32>
    %cst_35 = arith.constant dense<0.000000e+00> : vector<8xf32>
    %52 = vector.multi_reduction <add>, %51, %cst_35 [1] : vector<8x8xf32> to vector<8xf32>
    %53 = vector.shape_cast %52 : vector<8xf32> to vector<8x1xf32>
    %54 = arith.mulf %50, %50 : vector<8x8xf32>
    %cst_36 = arith.constant dense<0.000000e+00> : vector<8xf32>
    %55 = vector.multi_reduction <add>, %54, %cst_36 [1] : vector<8x8xf32> to vector<8xf32>
    %56 = vector.shape_cast %55 : vector<8xf32> to vector<8x1xf32>
    %cst_37 = arith.constant dense<0.000000e+00> : vector<8x8xf32>
    %57 = tpu.matmul %47, %50, %cst_37 {dimension_numbers = #tpu.dot_dimension_numbers<[1], [1], [0], [0], [0, 0, 1, 0], [], []>} : vector<8x8xf32>, vector<8x8xf32>, vector<8x8xf32> -> vector<8x8xf32>
    %58 = tpu.transpose %56, [1, 0] : vector<8x1xf32> -> vector<1x8xf32>
    %59 = vector.broadcast %53 : vector<8x1xf32> to vector<8x8xf32>
    %60 = vector.broadcast %58 : vector<1x8xf32> to vector<8x8xf32>
    %61 = arith.addf %59, %60 : vector<8x8xf32>
    %cst_38 = arith.constant 2.000000e+00 : f32
    %62 = vector.broadcast %cst_38 : f32 to vector<8x8xf32>
    %63 = arith.mulf %62, %57 : vector<8x8xf32>
    %64 = arith.subf %61, %63 : vector<8x8xf32>
    %cst_39 = arith.constant 0.000000e+00 : f32
    %65 = vector.broadcast %cst_39 : f32 to vector<8x8xf32>
    %66 = arith.maximumf %64, %65 : vector<8x8xf32>
    %67 = math.sqrt %66 : vector<8x8xf32>
    %cst_40 = arith.constant 0.000000e+00 : f32
    %68 = vector.broadcast %cst_40 : f32 to vector<8x8xf32>
    %69 = arith.subf %68, %67 : vector<8x8xf32>
    %70 = math.exp %69 : vector<8x8xf32>
    %cst_41 = arith.constant dense<0.000000e+00> : vector<8xf32>
    %71 = vector.multi_reduction <add>, %70, %cst_41 [1] : vector<8x8xf32> to vector<8xf32>
    %72 = vector.shape_cast %71 : vector<8xf32> to vector<8x1xf32>
    %73 = tpu.reciprocal %72 {approx = true} : vector<8x1xf32> -> vector<8x1xf32>
    %74 = vector.broadcast %73 : vector<8x1xf32> to vector<8x8xf32>
    %75 = arith.mulf %70, %74 : vector<8x8xf32>
    %76 = arith.truncf %75 : vector<8x8xf32> to vector<8x8xbf16>
    %c0_42 = arith.constant 0 : index
    %77 = arith.index_cast %42 : i32 to index
    %c0_43 = arith.constant 0 : index
    %c0_44 = arith.constant 0 : index
    %78 = vector.load %arg4[%c0_42, %77, %c0_43, %c0_44] : memref<1x2x8x8xf32, #tpu.memory_space<vmem>>, vector<1x1x8x8xf32>
    %79 = vector.shape_cast %78 : vector<1x1x8x8xf32> to vector<8x8xf32>
    %80 = arith.truncf %79 : vector<8x8xf32> to vector<8x8xbf16>
    %cst_45 = arith.constant dense<0.000000e+00> : vector<8x8xf32>
    %81 = tpu.matmul %76, %80, %cst_45 {dimension_numbers = #tpu.dot_dimension_numbers<[1], [0], [0], [1], [0, 0, 1, 1], [], []>} : vector<8x8xbf16>, vector<8x8xbf16>, vector<8x8xf32> -> vector<8x8xf32>
    %82 = arith.truncf %81 : vector<8x8xf32> to vector<8x8xbf16>
    %c0_46 = arith.constant 0 : index
    %83 = arith.index_cast %42 : i32 to index
    %c0_47 = arith.constant 0 : index
    %c0_48 = arith.constant 0 : index
    %84 = vector.load %arg5[%c0_46, %83, %c0_47, %c0_48] : memref<1x2x8x8xbf16, #tpu.memory_space<vmem>>, vector<1x1x8x8xbf16>
    %85 = vector.shape_cast %84 : vector<1x1x8x8xbf16> to vector<8x8xbf16>
    %86 = vector.shape_cast %82 : vector<8x8xbf16> to vector<1x1x8x8xbf16>
    tpu.vector_store %arg5[%c0_46, %83, %c0_47, %c0_48], %86 {strides = array<i32>} : memref<1x2x8x8xbf16, #tpu.memory_space<vmem>>, vector<1x1x8x8xbf16>,
    %87 = arith.addf %44, %75 : vector<8x8xf32>
    %c0_49 = arith.constant 0 : index
    %c0_50 = arith.constant 0 : index
    %c0_51 = arith.constant 0 : index
    %88 = vector.load %arg6[%c0_49, %c0_50, %c0_51] : memref<1x8x8xf32, #tpu.memory_space<vmem>>, vector<1x8x8xf32>
    %89 = vector.shape_cast %88 : vector<1x8x8xf32> to vector<8x8xf32>
    %90 = vector.shape_cast %87 : vector<8x8xf32> to vector<1x8x8xf32>
    tpu.vector_store %arg6[%c0_49, %c0_50, %c0_51], %90 {strides = array<i32>} : memref<1x8x8xf32, #tpu.memory_space<vmem>>, vector<1x8x8xf32>,
    %c1_i32_52 = arith.constant 1 : i32
    %c0_53 = arith.constant 0 : index
    %c0_54 = arith.constant 0 : index
    %c0_55 = arith.constant 0 : index
    %91 = vector.load %arg6[%c0_53, %c0_54, %c0_55] : memref<1x8x8xf32, #tpu.memory_space<vmem>>, vector<1x8x8xf32>
    %92 = vector.shape_cast %91 : vector<1x8x8xf32> to vector<8x8xf32>
    %cst_56 = arith.constant 5.000000e-01 : f32
    %93 = vector.broadcast %cst_56 : f32 to vector<8x8xf32>
    %94 = arith.mulf %92, %93 : vector<8x8xf32>
    %c0_57 = arith.constant 0 : index
    %c0_58 = arith.constant 0 : index
    %c0_59 = arith.constant 0 : index
    %95 = vector.load %arg6[%c0_57, %c0_58, %c0_59] : memref<1x8x8xf32, #tpu.memory_space<vmem>>, vector<1x8x8xf32>
    %96 = vector.shape_cast %95 : vector<1x8x8xf32> to vector<8x8xf32>
    %97 = vector.shape_cast %94 : vector<8x8xf32> to vector<1x8x8xf32>
    tpu.vector_store %arg6[%c0_57, %c0_58, %c0_59], %97 {strides = array<i32>} : memref<1x8x8xf32, #tpu.memory_space<vmem>>, vector<1x8x8xf32>,
    return
  }
  func.func @transform_0(%arg0: i32, %arg1: i32) -> (i32, i32, i32, i32) {
    %c0_i32 = arith.constant 0 : i32
    %c0_i32_0 = arith.constant 0 : i32
    %c0_i32_1 = arith.constant 0 : i32
    return %arg0, %c0_i32, %arg1, %c0_i32_0 : i32, i32, i32, i32
  }
  func.func @transform_1(%arg0: i32, %arg1: i32) -> (i32, i32, i32, i32) {
    %c0_i32 = arith.constant 0 : i32
    %c0_i32_0 = arith.constant 0 : i32
    %c0_i32_1 = arith.constant 0 : i32
    %c0_i32_2 = arith.constant 0 : i32
    return %arg0, %c0_i32, %c0_i32_0, %c0_i32_1 : i32, i32, i32, i32
  }
  func.func @transform_2(%arg0: i32, %arg1: i32) -> (i32, i32, i32, i32) {
    %c0_i32 = arith.constant 0 : i32
    %c0_i32_0 = arith.constant 0 : i32
    %c0_i32_1 = arith.constant 0 : i32
    %c0_i32_2 = arith.constant 0 : i32
    return %arg0, %c0_i32, %c0_i32_0, %c0_i32_1 : i32, i32, i32, i32
  }
  func.func @transform_3(%arg0: i32, %arg1: i32) -> (i32, i32, i32, i32) {
    %c0_i32 = arith.constant 0 : i32
    %c0_i32_0 = arith.constant 0 : i32
    %c0_i32_1 = arith.constant 0 : i32
    return %arg0, %c0_i32, %arg1, %c0_i32_0 : i32, i32, i32, i32
  }
  func.func @transform_4(%arg0: i32, %arg1: i32) -> (i32, i32, i32) {
    %c0_i32 = arith.constant 0 : i32
    %c0_i32_0 = arith.constant 0 : i32
    return %arg0, %arg1, %c0_i32 : i32, i32, i32
  }
}

module attributes {stable_mosaic.version = 11 : i64} {
  func.func @_uhg_linear_kernel(%arg0: i32, %arg1: memref<16x32xbf16, #tpu.memory_space<vmem>>, %arg2: memref<32x32xbf16, #tpu.memory_space<vmem>>, %arg3: memref<1x32xf32, #tpu.memory_space<vmem>>, %arg4: memref<16x32xf32, #tpu.memory_space<vmem>>) attributes {dimension_semantics = [#tpu.dimension_semantics<parallel>], iteration_bounds = array<i64: 1>, scalar_prefetch = 0 : i64, scratch_operands = 0 : i64, tpu.core_type = #tpu.core_type<tc>, window_params = [{transform_indices = @transform_0, window_bounds = array<i64: 16, 32>}, {pipeline_mode = #tpu.pipeline_mode<synchronous>, transform_indices = @transform_1, window_bounds = array<i64: 32, 32>}, {pipeline_mode = #tpu.pipeline_mode<synchronous>, transform_indices = @transform_2, window_bounds = array<i64: 1, 32>}, {transform_indices = @transform_3, window_bounds = array<i64: 16, 32>}]} {
    %c0 = arith.constant 0 : index
    %c0_0 = arith.constant 0 : index
    %0 = vector.load %arg1[%c0, %c0_0] : memref<16x32xbf16, #tpu.memory_space<vmem>>, vector<16x32xbf16>
    %c0_1 = arith.constant 0 : index
    %c0_2 = arith.constant 0 : index
    %1 = vector.load %arg2[%c0_1, %c0_2] : memref<32x32xbf16, #tpu.memory_space<vmem>>, vector<32x32xbf16>
    %cst = arith.constant dense<0.000000e+00> : vector<16x32xf32>
    %2 = tpu.matmul %0, %1, %cst {dimension_numbers = #tpu.dot_dimension_numbers<[1], [0], [0], [1], [0, 0, 1, 1], [], []>} : vector<16x32xbf16>, vector<32x32xbf16>, vector<16x32xf32> -> vector<16x32xf32>
    %c0_3 = arith.constant 0 : index
    %c0_4 = arith.constant 0 : index
    %3 = vector.load %arg3[%c0_3, %c0_4] : memref<1x32xf32, #tpu.memory_space<vmem>>, vector<1x32xf32>
    %4 = vector.broadcast %3 : vector<1x32xf32> to vector<16x32xf32>
    %5 = arith.addf %2, %4 : vector<16x32xf32>
    %6 = arith.mulf %5, %5 : vector<16x32xf32>
    %cst_5 = arith.constant dense<0.000000e+00> : vector<16xf32>
    %7 = vector.multi_reduction <add>, %6, %cst_5 [1] : vector<16x32xf32> to vector<16xf32>
    %8 = vector.shape_cast %7 : vector<16xf32> to vector<16x1xf32>
    %9 = math.sqrt %8 : vector<16x1xf32>
    %cst_6 = arith.constant 9.99999993E-9 : f32
    %10 = vector.broadcast %cst_6 : f32 to vector<16x1xf32>
    %11 = arith.addf %9, %10 : vector<16x1xf32>
    %12 = tpu.reciprocal %11 : vector<16x1xf32> -> vector<16x1xf32>
    %13 = vector.broadcast %12 : vector<16x1xf32> to vector<16x32xf32>
    %14 = arith.mulf %5, %13 : vector<16x32xf32>
    %c0_7 = arith.constant 0 : index
    %c0_8 = arith.constant 0 : index
    %15 = vector.load %arg4[%c0_7, %c0_8] : memref<16x32xf32, #tpu.memory_space<vmem>>, vector<16x32xf32>
    tpu.vector_store %arg4[%c0_7, %c0_8], %14 {strides = array<i32>} : memref<16x32xf32, #tpu.memory_space<vmem>>, vector<16x32xf32>,
    return
  }
  func.func @transform_0(%arg0: i32) -> (i32, i32) {
    %c0_i32 = arith.constant 0 : i32
    %c0_i32_0 = arith.constant 0 : i32
    return %arg0, %c0_i32 : i32, i32
  }
  func.func @transform_1(%arg0: i32) -> (i32, i32) {
    %c0_i32 = arith.constant 0 : i32
    %c0_i32_0 = arith.constant 0 : i32
    %c0_i32_1 = arith.constant 0 : i32
    return %c0_i32, %c0_i32_0 : i32, i32
  }
  func.func @transform_2(%arg0: i32) -> (i32, i32) {
    %c0_i32 = arith.constant 0 : i32
    %c0_i32_0 = arith.constant 0 : i32
    %c0_i32_1 = arith.constant 0 : i32
    return %c0_i32, %c0_i32_0 : i32, i32
  }
  func.func @transform_3(%arg0: i32) -> (i32, i32) {
    %c0_i32 = arith.constant 0 : i32
    %c0_i32_0 = arith.constant 0 : i32
    return %arg0, %c0_i32 : i32, i32
  }
}

</mosaic_0001>

<bundles_post_ra>
// kernel: uhg_multihead_attention.6
= control target key start
LH: loop header
LB: loop body
LE: loop exit
PB: predicated region body
PF: predicated region fallthrough
CT: control target
= control target key end

     0   :  { %v147_v0 = vmov 0.0   ;;  %vm148_vm0 = vmmov 0   ;;  %vm41_vm1 = vcmask 261120   ;;  %s195_s1 = inlined_call_operand.vmem [shape: bf16[32,32], index: 1, kind: input, shape index: {}]   ;;  %s196_s0 = inlined_call_operand.vmem [shape: f32[16,32], index: 0, kind: input, shape index: {}]   ;;  %s197_s2 = inlined_call_operand.vmem [shape: f32[1,32], index: 2, kind: input, shape index: {}]   ;;  %s198_s3 = inlined_call_operand.vmem [shape: f32[16,32], index: 3, kind: output, shape index: {}]  }
   0x1   :  { %127 = vmatprep.subr.bf16.mxu0 %v147_v0  ;;  %v137_v1 = vld [vmem:[%s195_s1] sm:$0xff]   ;;  %131 = vmatprep.mubr.msk.bf16.mxu0 %vm148_vm0, %v147_v0  ;;  %v138_v2 = vld [vmem:[%s195_s1 + $0x8] sm:$0xff]  }
   0x2   :  { %128 = vmatpush3.bf16.msra.mxu0 %v137_v1  ;;  %v15_v3 = vld [vmem:[%s196_s0] sm:$0xff]  ;;  %v16_v4 = vld [vmem:[%s196_s0 + $0x8] sm:$0xff] }
   0x3   :  { %129 = vmatprep.subr.bf16.mxu0 %v147_v0  ;;  %v17_v5 = vpack.c.bf16 %v16_v4, %v15_v3  ;;  %v120_v6 = vld [vmem:[%s197_s2] ss:$0 sm:$0xff] }
   0x6   :  { %130 = vmatpush3.bf16.msra.mxu0 %v138_v2 }
   0x9   :  { %132 = vmatmul.mubr.msk.bf16.vlgmr.msra.gmra.mrb[0].mxu0 %vm41_vm1, %v17_v5 }
  0xdc   :  { %v79_v7 = vpop.f32.mrb[0].mxu0 }
  0xdd   :  { %v80_v8 = vadd.f32 %v120_v6, %v79_v7  ;;  %v133_v9 = vpop.f32.mrb[1].mxu0 }
  0xde   :  { %v82_v10 = vpop.f32.mrb[2].mxu0 }
  0xdf   :  { %v83_v11 = vadd.f32 %v120_v6, %v82_v10  ;;  %v134_v12 = vpop.f32.mrb[3].mxu0  ;;  %v86_v13 = vmul.f32 %v80_v8, %v80_v8 }
  0xe1   :  { %v88_v14 = vsel %vm41_vm1, %v86_v13, 0.0  ;;  %v87_v15 = vmul.f32 %v83_v11, %v83_v11 }
  0xe2   :  { %89 = vadd.xlane.f32.xlu0 %v88_v14 }
  0xe3   :  { %v91_v16 = vsel %vm41_vm1, %v87_v15, 0.0 }
  0xe6   :  { %92 = vadd.xlane.f32.xlu0 %v91_v16 }
 0x16f   :  { %v90_v17 = vpop.xlane.xlu0 %89 }
 0x170   :  { %139 = vrsqrt.f32 %v90_v17  ;;  %vm96_vm2 = vcmp.eq.f32.partialorder %v90_v17, inf  ;;  %v99_v21 = vand.u32 2147483648, %v90_v17  ;;  %vm98_vm3 = vcmp.eq.f32.partialorder %v90_v17, 0.0 }
 0x173   :  { %v93_v18 = vpop.xlane.xlu0 %92 }
 0x174   :  { %141 = vrsqrt.f32 %v93_v18  ;;  %vm103_vm4 = vcmp.eq.f32.partialorder %v93_v18, inf  ;;  %v106_v27 = vand.u32 2147483648, %v93_v18  ;;  %vm105_vm5 = vcmp.eq.f32.partialorder %v93_v18, 0.0 }
 0x17a   :  { %v140_v19 = vpop.eup %139 }
 0x17b   :  { %v95_v20 = vmul.f32 %v140_v19, %v90_v17 }
 0x17d   :  { %v97_v22 = vsel %vm96_vm2, %v90_v17, %v95_v20 }
 0x17e   :  { %v142_v23 = vpop.eup %141  ;;  %v100_v24 = vsel %vm98_vm3, %v99_v21, %v97_v22 }
 0x17f   :  { %v108_v25 = vadd.f32 1e-08, %v100_v24  ;;  %v102_v26 = vmul.f32 %v142_v23, %v93_v18 }
 0x181   :  { %143 = vrcp.f32 %v108_v25  ;;  %v104_v28 = vsel %vm103_vm4, %v93_v18, %v102_v26 }
 0x182   :  { %v107_v29 = vsel %vm105_vm5, %v106_v27, %v104_v28 }
 0x183   :  { %v109_v30 = vadd.f32 1e-08, %v107_v29 }
 0x185   :  { %145 = vrcp.f32 %v109_v30 }
 0x18b   :  { %v144_v31 = vpop.eup %143 }
 0x18c   :  { %v112_v32 = vmul.f32 %v144_v31, %v80_v8 }
 0x18e   :  { %114 = vst.msk [vmem:[%s198_s3] sm:$0xff] %vm41_vm1, %v112_v32 }
 0x18f   :  { %v146_v33 = vpop.eup %145 }
 0x190   :  { %v113_v34 = vmul.f32 %v146_v33, %v83_v11 }
 0x192   :  { %115 = vst.msk [vmem:[%s198_s3 + $0x8] sm:$0xff] %vm41_vm1, %v113_v34 }

// kernel: uhg_multihead_attention.8
= control target key start
LH: loop header
LB: loop body
LE: loop exit
PB: predicated region body
PF: predicated region fallthrough
CT: control target
= control target key end

     0   :  { %s984_s15 = smov 0   ;;  %s986_s16 = smov 0   ;;  %s1054_s0 = inlined_call_operand.vmem [shape: f32[4,2,8,8], index: 0, kind: input, shape index: {}]   ;;  %s1055_s1 = inlined_call_operand.vmem [shape: f32[4,2,8,8], index: 1, kind: input, shape index: {}]   ;;  %s1056_s2 = inlined_call_operand.vmem [shape: f32[4,2,8,8], index: 2, kind: input, shape index: {}]   ;;  %s1057_s3 = inlined_call_operand.vmem [shape: bf16[4,2,8,8], index: 3, kind: output, shape index: {0}]   ;;  %s1058_s4 = inlined_call_operand.vmem [shape: f32[4,8,8], index: 4, kind: output, shape index: {1}]  }
   0x1   :  { %s988_s17 = smov 0  }
   0x2 LB: > { %s27_s18 = sadd.s32 1, %s951_s16  ;;  %p839_p0 = scmp.ge.s32.totalorder %s955_s17, 1  ;;  %s955_s17 = sphi %s988_s17, %s15_s17   ;;  %s951_s16 = sphi %s986_s16, %s1060_s16   ;;  %s947_s15 = sphi %s984_s15, %s1059_s15  }
   0x3   : > { %p29_p1 = scmp.ge.s32.totalorder %s27_s18, 4  ;;  %p206_p2 = scmp.lt.s32.totalorder %s955_s17, 5 }
   0x5   : > { %s1062_s18 = smov (%p29_p1, %s27_s18), 0  ;;  %p207_p3 = pnand %p839_p0, %p206_p2 }
   0x6   : > { %p255_p4 = scmp.lt.s32.totalorder (!%p207_p3), %s947_s15, 3  ;;  %v957_v0 = vmov (!%p207_p3), 0.0   ;;  %vm958_vm0 = vmmov (!%p207_p3), 0   ;;  %vm292_vm1 = vcmask (!%p207_p3), 64512   ;;  %v408_v19 = vlaneseq (!%p207_p3) }
   0x7   : > { %210 = sbr.rel (%p207_p3) target bundleno = 707 (0x2c3), region = 32  ;;  %873 = vmatprep.subr.mxu1 (!%p207_p3), %v957_v0  ;;  %875 = vmatprep.mubr.msk.f32.mxu1 (!%p207_p3), %vm958_vm0, %v957_v0  ;;  %vm437_vm6 = vcmask (!%p207_p3), 1043456   ;;  %vm482_vm7 = vcmask (!%p207_p3), 60416  }
   0x8   : > { %884 = vmatprep.subr.mxu0 (!%p207_p3), %v957_v0  ;;  %886 = vmatprep.mubr.msk.f32.mxu0 (!%p207_p3), %vm958_vm0, %v957_v0  ;;  %v409_v20 = vshrl.u32 (!%p207_p3), %v408_v19, 7 }
   0xa   : > { %v410_v22 = vsub.s32 (!%p207_p3), 0, %v409_v20 }
   0xe   : > { %s1064_s15 = smov (!%p255_p4, %s947_s15), 3 }
   0xf   : > { %s1007_s19 = sshll.u32 %s1064_s15, 4  ;;  %s864_s29 = sshll.u32 %s1064_s15, 3 }
  0x10   : > { %s267_s22 = scalar_lea.vmem %s1055_s1, %s1007_s19  ;;  %s262_s25 = scalar_lea.vmem %s1054_s0, %s1007_s19 }
  0x11   : > { %v290_v1 = vld [vmem:[%s267_s22] sm:$0xff]  ;;  %v853_v2 = vld [vmem:[%s267_s22 + $0x8] sm:$0xff]  ;;  %s272_s28 = scalar_lea.vmem %s1056_s2, %s1007_s19  ;;  %s287_s6 = scalar_lea.vmem %s1058_s4, %s864_s29 }
  0x12   : > { %v289_v3 = vld [vmem:[%s262_s25] sm:$0xff]  ;;  %v296_v4 = vmul.f32 %v290_v1, %v290_v1  ;;  %v494_v5 = vmul.f32 %v853_v2, %v853_v2  ;;  %874 = vmatpush3.xpose.msk.msra.mxu1 %vm292_vm1, %v290_v1  ;;  %885 = vmatpush3.xpose.msk.msra.mxu0 %vm292_vm1, %v853_v2  ;;  %v852_v6 = vld [vmem:[%s262_s25 + $0x8] sm:$0xff]  ;;  %s280_s9 = scalar_lea.vmem %s1057_s3, %s864_s29 }
  0x13   : > { %v291_v7 = vmul.f32 %v289_v3, %v289_v3  ;;  %v490_v8 = vmul.f32 %v852_v6, %v852_v6  ;;  %878 = vmatprep.subr.bf16.mxu1 %v957_v0  ;;  %889 = vmatprep.subr.bf16.mxu0 %v957_v0  ;;  %v432_v54 = vld [vmem:[%s272_s28] sm:$0xff]  ;;  %v856_v57 = vld [vmem:[%s272_s28 + $0x8] sm:$0xff] }
  0x14   : > { %v297_v9 = vsel %vm292_vm1, %v296_v4, 0.0  ;;  %v495_v11 = vsel %vm292_vm1, %v494_v5, 0.0  ;;  %v433_v55 = vpack.c.bf16 %v432_v54, %v432_v54  ;;  %v632_v58 = vpack.c.bf16 %v856_v57, %v856_v57 }
  0x15   : > { %v293_v10 = vsel %vm292_vm1, %v291_v7, 0.0  ;;  %298 = vadd.xlane.f32.xlu0 %v297_v9  ;;  %876 = vmatmul.mubr.msk.f32.vlgmr.msra.gmra.mrb[0].mxu1 %vm292_vm1, %v289_v3  ;;  %v491_v12 = vsel %vm292_vm1, %v490_v8, 0.0 }
  0x16   : > { %887 = vmatmul.mubr.msk.f32.vlgmr.msra.gmra.mrb[0].mxu0 %vm292_vm1, %v852_v6  ;;  %294 = vadd.xlane.f32.xlu1 %v293_v10  ;;  %v439_v56 = vsel %vm437_vm6, %v433_v55, 0  ;;  %v637_v59 = vsel %vm437_vm6, %v632_v58, 0 }
  0x17   : > { %880 = vmatprep.mubr.msk.bf16.mxu1 %vm958_vm0, %v957_v0  ;;  %891 = vmatprep.mubr.msk.bf16.mxu0 %vm958_vm0, %v957_v0 }
  0x18   : > { %879 = vmatpush3.bf16.msra.mxu1 %v439_v56  ;;  %890 = vmatpush3.bf16.msra.mxu0 %v637_v59 }
  0x19   : > { %496 = vadd.xlane.f32.xlu0 %v495_v11 }
  0x1a   : > { %492 = vadd.xlane.f32.xlu1 %v491_v12 }
  0xa2   : > { %v299_v13 = vpop.xlane.xlu0 %298 }
  0xa3   : > { %376 = vxpose.xlu0.b32.start.end [1/1] (short) (narrow) %v299_v13, 8  ;;  %v295_v21 = vpop.xlane.xlu1 %294 }
  0xa6   : > { %v497_v14 = vpop.xlane.xlu0 %496 }
  0xa7   : > { %574 = vxpose.xlu1.b32.start.end [1/1] (short) (narrow) %v497_v14, 8  ;;  %v493_v23 = vpop.xlane.xlu1 %492 }
  0xe8   : > { %v372_v15 = vpop.f32.mrb[0].mxu1 }
  0xe9   : > { %v570_v16 = vpop.f32.mrb[0].mxu0  ;;  %v877_v17 = vpop.f32.mrb[1].mxu1  ;;  %v413_v26 = vmul.f32 2.0, %v372_v15 }
  0xea   : > { %v888_v18 = vpop.f32.mrb[1].mxu0  ;;  %v611_v31 = vmul.f32 2.0, %v570_v16 }
 0x123   : > { %v392_v24 = vpop.trf.xlu0 }
 0x124   : > { %v411_v25 = vrot.slane %v392_v24, %v410_v22 }
 0x126   : > { %v412_v27 = vadd.f32 %v411_v25, %v295_v21 }
 0x127   : > { %v590_v28 = vpop.trf.xlu1 }
 0x128   : > { %v414_v29 = vsub.f32 %v412_v27, %v413_v26  ;;  %v609_v30 = vrot.slane %v590_v28, %v410_v22 }
 0x12a   : > { %v415_v32 = vmax.f32 %v414_v29, 0.0  ;;  %v610_v33 = vadd.f32 %v609_v30, %v493_v23 }
 0x12c   : > { %921 = vrsqrt.f32 %v415_v32  ;;  %v612_v34 = vsub.f32 %v610_v33, %v611_v31  ;;  %vm418_vm2 = vcmp.eq.f32.partialorder %v415_v32, inf  ;;  %v421_v38 = vand.u32 2147483648, %v415_v32 }
 0x12d   : > { %vm420_vm3 = vcmp.eq.f32.partialorder %v415_v32, 0.0 }
 0x12e   : > { %v613_v35 = vmax.f32 %v612_v34, 0.0 }
 0x130   : > { %923 = vrsqrt.f32 %v613_v35  ;;  %vm616_vm4 = vcmp.eq.f32.partialorder %v613_v35, inf  ;;  %v619_v44 = vand.u32 2147483648, %v613_v35  ;;  %vm618_vm5 = vcmp.eq.f32.partialorder %v613_v35, 0.0 }
 0x136   : > { %v922_v36 = vpop.eup %921 }
 0x137   : > { %v417_v37 = vmul.f32 %v922_v36, %v415_v32 }
 0x139   : > { %v419_v39 = vsel %vm418_vm2, %v415_v32, %v417_v37 }
 0x13a   : > { %v924_v40 = vpop.eup %923  ;;  %v422_v41 = vsel %vm420_vm3, %v421_v38, %v419_v39 }
 0x13b   : > { %v423_v42 = vsub.f32 0.0, %v422_v41  ;;  %v615_v43 = vmul.f32 %v924_v40, %v613_v35 }
 0x13d   : > { %v424_v45 = vmul.f32 1.442695, %v423_v42  ;;  %v617_v46 = vsel %vm616_vm4, %v613_v35, %v615_v43 }
 0x13e   : > { %v620_v47 = vsel %vm618_vm5, %v619_v44, %v617_v46 }
 0x13f   : > { %925 = vpow2.f32 %v424_v45  ;;  %v621_v48 = vsub.f32 0.0, %v620_v47 }
 0x141   : > { %v622_v49 = vmul.f32 1.442695, %v621_v48 }
 0x143   : > { %927 = vpow2.f32 %v622_v49 }
 0x149   : > { %v926_v50 = vpop.eup %925 }
 0x14a   : > { %v426_v51 = vsel %vm292_vm1, %v926_v50, 0.0 }
 0x14b   : > { %427 = vadd.xlane.f32.xlu0 %v426_v51 }
 0x14d   : > { %v928_v52 = vpop.eup %927 }
 0x14e   : > { %v624_v53 = vsel %vm292_vm1, %v928_v52, 0.0 }
 0x14f   : > { %625 = vadd.xlane.f32.xlu1 %v624_v53 }
 0x1d8   : > { %v428_v60 = vpop.xlane.xlu0 %427 }
 0x1d9   : > { %929 = vrcp.f32 %v428_v60 }
 0x1dc   : > { %v626_v61 = vpop.xlane.xlu1 %625 }
 0x1dd   : > { %931 = vrcp.f32 %v626_v61 }
 0x1e3   : > { %v930_v62 = vpop.eup %929 }
 0x1e4   : > { %v430_v63 = vmul.f32 %v930_v62, %v926_v50 }
 0x1e6   : > { %v431_v0 = vpack.c.bf16 %v430_v63, %v430_v63  ;;  %484 = vst.msk [vmem:[%s287_s6] sm:$0xff] %vm292_vm1, %v430_v63 }
 0x1e7   : > { %v932_v1 = vpop.eup %931 }
 0x1e8   : > { %v628_v2 = vmul.f32 %v932_v1, %v928_v52  ;;  %881 = vmatmul.mubr.msk.bf16.vlgmr.msra.gmra.mrb[4].mxu1 %vm292_vm1, %v431_v0 }
 0x1ea   : > { %v629_v3 = vpack.c.bf16 %v628_v2, %v628_v2 }
 0x1ec   : > { %892 = vmatmul.mubr.msk.bf16.vlgmr.msra.gmra.mrb[4].mxu0 %vm292_vm1, %v629_v3 }
 0x1ed   : > { %v485_v4 = vld [vmem:[%s287_s6] sm:$0xff] }
 0x1ee   : > { %v682_v5 = vadd.f32 %v628_v2, %v485_v4 }
 0x1f0   : > { %683 = vst.msk [vmem:[%s287_s6] sm:$0xff] %vm292_vm1, %v682_v5 }
 0x1f7   : > { %v684_v6 = vld [vmem:[%s287_s6] sm:$0xff] }
 0x1f8   : > { %v685_v7 = vmul.f32 0.5, %v684_v6 }
 0x1fa   : > { %686 = vst.msk [vmem:[%s287_s6] sm:$0xff] %vm292_vm1, %v685_v7 }
 0x2bb   : > { %v475_v8 = vpop.f32.mrb[4].mxu1 }
 0x2bc   : > { %v481_v9 = vpack.c.bf16 %v475_v8, %v475_v8  ;;  %v882_v10 = vpop.f32.mrb[5].mxu1 }
 0x2bd   : > { %v478_v11 = vpop.f32.mrb[6].mxu1 }
 0x2be   : > { %483 = vst.msk [vmem:[%s280_s9] sm:$0xf] %vm482_vm7, %v481_v9  ;;  %v883_v12 = vpop.f32.mrb[7].mxu1 }
 0x2bf   : > { %v673_v13 = vpop.f32.mrb[4].mxu0 }
 0x2c0   : > { %v679_v14 = vpack.c.bf16 %v673_v13, %v673_v13  ;;  %v893_v15 = vpop.f32.mrb[5].mxu0 }
 0x2c1   : > { %v676_v16 = vpop.f32.mrb[6].mxu0 }
 0x2c2   : > { %858 = vst.msk [vmem:[%s280_s9 + $0x4] sm:$0xf] %vm482_vm7, %v679_v14  ;;  %v894_v17 = vpop.f32.mrb[7].mxu0 }
 0x2c3 PF: > { %s15_s17 = sadd.s32 1, %s955_s17   ;;  %s1059_s15 = smov %s951_s16 }
 0x2c4   : > { %p12_p5 = scmp.ge.s32.totalorder %s15_s17, 6   ;;  %s1060_s16 = smov %s1062_s18 }
 0x2c6   :  { %14 = sbr.rel (!%p12_p5) target bundleno = 2 (0x2), region = 84 }

// kernel: uhg_multihead_attention.9
= control target key start
LH: loop header
LB: loop body
LE: loop exit
PB: predicated region body
PF: predicated region fallthrough
CT: control target
= control target key end

     0   :  { %v193_v1 = vmov 0.0   ;;  %vm194_vm0 = vmmov 0   ;;  %s247_s0 = inlined_call_operand.vmem [shape: bf16[16,32], index: 0, kind: input, shape index: {}]   ;;  %s248_s1 = inlined_call_operand.vmem [shape: bf16[32,32], index: 1, kind: input, shape index: {}]   ;;  %s249_s2 = inlined_call_operand.vmem [shape: f32[1,32], index: 2, kind: input, shape index: {}]   ;;  %s250_s3 = inlined_call_operand.hbm [shape: f32[16,32], index: 3, kind: output, shape index: {}]  }
   0x1   :  { %v158_v0 = vld [vmem:[%s248_s1] sm:$0xff]   ;;  %145 = vmatprep.subr.bf16.mxu0 %v193_v1  ;;  %v159_v2 = vld [vmem:[%s248_s1 + $0x8] sm:$0xff]   ;;  %149 = vmatprep.mubr.msk.bf16.mxu0 %vm194_vm0, %v193_v1 }
   0x2   :  { %146 = vmatpush3.bf16.msra.mxu0 %v158_v0 }
   0x3   :  { %147 = vmatprep.subr.bf16.mxu0 %v193_v1 }
   0x4   :  { %8 = vsyncpa [#allocation3], 0  ;;  %v160_v3 = vld [vmem:[%s247_s0] sm:$0xff]   ;;  %vm46_vm1 = vcmask 261120   ;;  %s195_s0 = smov [#allocation2]  }
   0x5   :  { %v137_v4 = vld [vmem:[%s249_s2] ss:$0 sm:$0xff]  ;;  %s126_s1 = sshll.u32 %s195_s0, 4  ;;  %s127_s1 = int_to_ptr.vmem [resolvable:$true] %s126_s1 }
   0x6   :  { %148 = vmatpush3.bf16.msra.mxu0 %v159_v2  ;;  %s169_s2 = scalar_lea.vmem %s127_s1, 256  ;;  %p174_p1 = scmp.lt.s32.totalorder %s127_s1, %s127_s1 }
   0x7   :  { %p170_p0 = scmp.ne.s32.totalorder %s127_s1, %s169_s2  ;;  %p175_p2 = scmp.lt.s32.totalorder %s169_s2, %s169_s2 }
   0x9   :  { %150 = vmatmul.mubr.msk.bf16.vlgmr.msra.gmra.mrb[0].mxu0 %vm46_vm1, %v160_v3  ;;  %p176_p3 = por %p175_p2, %p174_p1 }
   0xb   :  { %p177_p4 = pnand %p176_p3, %p170_p0 }
  0xdc   :  { %v84_v5 = vpop.f32.mrb[0].mxu0 }
  0xdd   :  { %v85_v6 = vadd.f32 %v137_v4, %v84_v5  ;;  %v151_v7 = vpop.f32.mrb[1].mxu0 }
  0xde   :  { %v87_v8 = vpop.f32.mrb[2].mxu0 }
  0xdf   :  { %v88_v9 = vadd.f32 %v137_v4, %v87_v8  ;;  %v152_v10 = vpop.f32.mrb[3].mxu0  ;;  %v91_v11 = vmul.f32 %v85_v6, %v85_v6 }
  0xe1   :  { %v93_v12 = vsel %vm46_vm1, %v91_v11, 0.0  ;;  %v92_v13 = vmul.f32 %v88_v9, %v88_v9 }
  0xe2   :  { %94 = vadd.xlane.f32.xlu0 %v93_v12 }
  0xe3   :  { %v96_v14 = vsel %vm46_vm1, %v92_v13, 0.0 }
  0xe6   :  { %97 = vadd.xlane.f32.xlu0 %v96_v14 }
 0x16f   :  { %v95_v15 = vpop.xlane.xlu0 %94 }
 0x170   :  { %161 = vrsqrt.f32 %v95_v15  ;;  %vm101_vm2 = vcmp.eq.f32.partialorder %v95_v15, inf  ;;  %v104_v19 = vand.u32 2147483648, %v95_v15  ;;  %vm103_vm3 = vcmp.eq.f32.partialorder %v95_v15, 0.0 }
 0x173   :  { %v98_v16 = vpop.xlane.xlu0 %97 }
 0x174   :  { %163 = vrsqrt.f32 %v98_v16  ;;  %vm108_vm4 = vcmp.eq.f32.partialorder %v98_v16, inf  ;;  %v111_v25 = vand.u32 2147483648, %v98_v16  ;;  %vm110_vm5 = vcmp.eq.f32.partialorder %v98_v16, 0.0 }
 0x17a   :  { %v162_v17 = vpop.eup %161 }
 0x17b   :  { %v100_v18 = vmul.f32 %v162_v17, %v95_v15 }
 0x17d   :  { %v102_v20 = vsel %vm101_vm2, %v95_v15, %v100_v18 }
 0x17e   :  { %v164_v21 = vpop.eup %163  ;;  %v105_v22 = vsel %vm103_vm3, %v104_v19, %v102_v20 }
 0x17f   :  { %v113_v23 = vadd.f32 1e-08, %v105_v22  ;;  %v107_v24 = vmul.f32 %v164_v21, %v98_v16 }
 0x181   :  { %165 = vrcp.f32 %v113_v23  ;;  %v109_v26 = vsel %vm108_vm4, %v98_v16, %v107_v24 }
 0x182   :  { %v112_v27 = vsel %vm110_vm5, %v111_v25, %v109_v26 }
 0x183   :  { %v114_v28 = vadd.f32 1e-08, %v112_v27 }
 0x185   :  { %167 = vrcp.f32 %v114_v28 }
 0x18b   :  { %v166_v29 = vpop.eup %165 }
 0x18c   :  { %v117_v30 = vmul.f32 %v166_v29, %v85_v6 }
 0x18e   :  { %119 = vst.msk [vmem:[#allocation2] sm:$0xff] %vm46_vm1, %v117_v30 }
 0x18f   :  { %v168_v31 = vpop.eup %167 }
 0x190   :  { %v118_v32 = vmul.f32 %v168_v31, %v88_v9 }
 0x192   :  { %120 = vst.msk [vmem:[#allocation2 + $0x8] sm:$0xff] %vm46_vm1, %v118_v32 }
 0x193   :  { %180 = shalt.err (!%p177_p4)
}
 0x194   :  { %s181_s22 = scalar_lea.hbm %s250_s3, 256 }
 0x195   :  { %p182_p5 = scmp.ne.s32.totalorder %s250_s3, %s181_s22  ;;  %p185_p6 = scmp.lt.u32.totalorder %s181_s22, %s250_s3 }
 0x197   :  { %p187_p7 = pnand %p185_p6, %p182_p5 }
 0x199   :  { %190 = shalt.err (!%p187_p7)
}
 0x19a   :  { %s196_s27 = smov 128   ;;  %s197_s28 = smov 8  }
 0x19b   :  { %132 = dma.vmem_to_hbm [thread:$0]  %s127_s1, 256, %s250_s3, [#allocation3], %s196_s27, %s196_s27, %s197_s28  }
 0x19c   :  { %191 = dma.done.wait [#allocation3], 256  }
 0x19d   :  { %192 = vsyncadd [#allocation3], 4294967040 }
 0x19e   :  { %136 = vsyncpa [#allocation3], 1 }

</bundles_post_ra>
